<compile_context>
chip_gen: v7x
topology: tpu7x:2x2x1
jax: 0.10.0
libtpu: 0.0.40
codegen_flags: <defaults>
</compile_context>

<pallas_src>
import jax
import jax.numpy as jnp
from jax.experimental import pallas as pl
from jax.experimental.pallas import tpu as pltpu


def _model_kernel(patches_ref, seg_ref, wconv_t_ref, bconv_ref, wfc_t_ref,
                  bfc_ref, out_ref):
    # patches_ref: (K, Nb*HW)     im2col patches, batch*spatial on the lane axis
    # seg_ref:     (Nb*HW, Nb)    block-diagonal ones -> per-image spatial sum
    # wconv_t_ref: (Cmid, K)      conv weights, reshaped + transposed
    # bconv_ref:   (Cmid, 1)
    # wfc_t_ref:   (NCLS, Cmid)   FC weights^T, pre-scaled by 1/(H*W) (GAP folded in)
    # bfc_ref:     (NCLS, 1)
    # out_ref:     (1, NCLS, Nb)  'cls_diff' (transposed) for this block of images
    acc = jnp.dot(wconv_t_ref[...], patches_ref[...],
                  preferred_element_type=jnp.float32)            # (Cmid, Nb*HW)
    feat = jnp.maximum(acc + bconv_ref[...], 0.0)                # ReLU, lane-dense
    gap = jnp.dot(feat, seg_ref[...],
                  preferred_element_type=jnp.float32)            # (Cmid, Nb)
    cls = jnp.dot(wfc_t_ref[...], gap,
                  preferred_element_type=jnp.float32) + bfc_ref[...]   # (NCLS, Nb)
    out_ref[...] = cls[None].astype(out_ref.dtype)


def synthetic_model_pallas(x_nchw, params):
    """Synthetic siamese-head model: returns {'cls_diff': (N, NCLS)}."""
    wconv, bconv, wfc, bfc = params
    n, cin, h, w = x_nchw.shape
    kh, kw, _, cmid = wconv.shape
    ncls = wfc.shape[1]
    hw = h * w
    k = kh * kw * cin

    # >= 2 parallel grid blocks when possible (v7x has 2 TensorCores).
    num_blocks = 2 if (n >= 2 and n % 2 == 0) else 1
    nb = n // num_blocks

    # ---- glue in plain JAX: NCHW->NHWC, zero-pad, im2col, weight repacking ----
    x_nhwc = jnp.transpose(x_nchw, (0, 2, 3, 1)).astype(jnp.float32)
    xp = jnp.pad(x_nhwc, ((0, 0), (1, 1), (1, 1), (0, 0)))
    taps = [xp[:, ky:ky + h, kx:kx + w, :].reshape(n * hw, cin)
            for ky in range(kh) for kx in range(kw)]
    patches_t = jnp.concatenate(taps, axis=1).T                     # (K, N*HW)

    seg = jnp.repeat(jnp.eye(nb, dtype=jnp.float32), hw, axis=0)    # (Nb*HW, Nb)
    wconv_t = wconv.reshape(k, cmid).T.astype(jnp.float32)          # (Cmid, K)
    wfc_t = (wfc.astype(jnp.float32) / hw).T                        # (NCLS, Cmid)
    bconv2 = bconv.reshape(cmid, 1).astype(jnp.float32)
    bfc2 = bfc.reshape(ncls, 1).astype(jnp.float32)

    out3 = pl.pallas_call(
        _model_kernel,
        out_shape=jax.ShapeDtypeStruct((num_blocks, ncls, nb), jnp.float32),
        grid_spec=pltpu.PrefetchScalarGridSpec(
            num_scalar_prefetch=0,
            grid=(num_blocks,),
            in_specs=[
                pl.BlockSpec((k, nb * hw), lambda b: (0, b)),       # patches slab
                pl.BlockSpec((nb * hw, nb), lambda b: (0, 0)),      # GAP seg matrix
                pl.BlockSpec((cmid, k), lambda b: (0, 0)),          # conv weights
                pl.BlockSpec((cmid, 1), lambda b: (0, 0)),          # conv bias
                pl.BlockSpec((ncls, cmid), lambda b: (0, 0)),       # fc weights (scaled)
                pl.BlockSpec((ncls, 1), lambda b: (0, 0)),          # fc bias
            ],
            out_specs=pl.BlockSpec((1, ncls, nb), lambda b: (b, 0, 0)),
        ),
        compiler_params=pltpu.CompilerParams(
            dimension_semantics=("parallel",)),
    )(patches_t, seg, wconv_t, bconv2, wfc_t, bfc2)

    # (num_blocks, NCLS, Nb) -> (N, NCLS)
    cls_diff = jnp.transpose(out3, (0, 2, 1)).reshape(n, ncls)
    return {"cls_diff": cls_diff}


def diff_output_wrapper(x_nchw, params):
    """Faithful to DiffOutputWrapper.forward: run the model, return dict['cls_diff']."""
    # TODO(synk): the real wrapped nn.Module is injected at runtime; we use the
    # synthetic conv->ReLU->GAP->FC head above as the model.
    return synthetic_model_pallas(x_nchw, params)["cls_diff"]


def _reference(x_nchw, params):
    """Pure-JAX reference for the synthetic model (correctness check)."""
    wconv, bconv, wfc, bfc = params
    x = x_nchw.astype(jnp.float32)
    y = jax.lax.conv_general_dilated(
        x, wconv, window_strides=(1, 1), padding="SAME",
        dimension_numbers=("NCHW", "HWIO", "NCHW"))
    y = y + bconv.reshape(1, -1, 1, 1)
    y = jnp.maximum(y, 0.0)
    gap = jnp.mean(y, axis=(2, 3))                       # (N, Cmid)
    return gap @ wfc + bfc.reshape(1, -1)                # (N, NCLS)


if __name__ == "__main__":
    N, CIN, H, W = 2, 4, 16, 16
    CMID, NCLS = 8, 2

    key = jax.random.PRNGKey(0)
    k_x, k_wc, k_bc, k_wf, k_bf = jax.random.split(key, 5)

    x = jax.random.normal(k_x, (N, CIN, H, W), dtype=jnp.float32)
    wconv = jax.random.normal(k_wc, (3, 3, CIN, CMID), dtype=jnp.float32) * 0.1
    bconv = jax.random.normal(k_bc, (CMID,), dtype=jnp.float32) * 0.1
    wfc = jax.random.normal(k_wf, (CMID, NCLS), dtype=jnp.float32) * 0.1
    bfc = jax.random.normal(k_bf, (NCLS,), dtype=jnp.float32) * 0.1
    params = (wconv, bconv, wfc, bfc)

    out = diff_output_wrapper(x, params)
    out = jax.block_until_ready(out)

    ref = jax.block_until_ready(_reference(x, params))
    assert out.shape == (N, NCLS)
    assert jnp.allclose(out, ref, atol=1e-4, rtol=1e-4), (out, ref)

    print("KERNEL_OK")
</pallas_src>

<mosaic_0001>
module attributes {stable_mosaic.version = 11 : i64} {
  func.func @_model_kernel(%arg0: i32, %arg1: memref<36x256xf32, #tpu.memory_space<vmem>>, %arg2: memref<256x1xf32, #tpu.memory_space<vmem>>, %arg3: memref<8x36xf32, #tpu.memory_space<vmem>>, %arg4: memref<8x1xf32, #tpu.memory_space<vmem>>, %arg5: memref<2x8xf32, #tpu.memory_space<vmem>>, %arg6: memref<2x1xf32, #tpu.memory_space<vmem>>, %arg7: memref<1x2x1xf32, #tpu.memory_space<vmem>>) attributes {dimension_semantics = [#tpu.dimension_semantics<parallel>], iteration_bounds = array<i64: 2>, scalar_prefetch = 0 : i64, scratch_operands = 0 : i64, tpu.core_type = #tpu.core_type<tc>, window_params = [{transform_indices = @transform_0, window_bounds = array<i64: 36, 256>}, {pipeline_mode = #tpu.pipeline_mode<synchronous>, transform_indices = @transform_1, window_bounds = array<i64: 256, 1>}, {pipeline_mode = #tpu.pipeline_mode<synchronous>, transform_indices = @transform_2, window_bounds = array<i64: 8, 36>}, {pipeline_mode = #tpu.pipeline_mode<synchronous>, transform_indices = @transform_3, window_bounds = array<i64: 8, 1>}, {pipeline_mode = #tpu.pipeline_mode<synchronous>, transform_indices = @transform_4, window_bounds = array<i64: 2, 8>}, {pipeline_mode = #tpu.pipeline_mode<synchronous>, transform_indices = @transform_5, window_bounds = array<i64: 2, 1>}, {transform_indices = @transform_6, window_bounds = array<i64: 1, 2, 1>}]} {
    %c0 = arith.constant 0 : index
    %c0_0 = arith.constant 0 : index
    %0 = vector.load %arg3[%c0, %c0_0] : memref<8x36xf32, #tpu.memory_space<vmem>>, vector<8x36xf32>
    %c0_1 = arith.constant 0 : index
    %c0_2 = arith.constant 0 : index
    %1 = vector.load %arg1[%c0_1, %c0_2] : memref<36x256xf32, #tpu.memory_space<vmem>>, vector<36x256xf32>
    %cst = arith.constant dense<0.000000e+00> : vector<8x256xf32>
    %2 = tpu.matmul %0, %1, %cst {dimension_numbers = #tpu.dot_dimension_numbers<[1], [0], [0], [1], [0, 0, 1, 1], [], []>} : vector<8x36xf32>, vector<36x256xf32>, vector<8x256xf32> -> vector<8x256xf32>
    %c0_3 = arith.constant 0 : index
    %c0_4 = arith.constant 0 : index
    %3 = vector.load %arg4[%c0_3, %c0_4] : memref<8x1xf32, #tpu.memory_space<vmem>>, vector<8x1xf32>
    %4 = vector.broadcast %3 : vector<8x1xf32> to vector<8x256xf32>
    %5 = arith.addf %2, %4 : vector<8x256xf32>
    %cst_5 = arith.constant 0.000000e+00 : f32
    %6 = vector.broadcast %cst_5 : f32 to vector<8x256xf32>
    %7 = arith.maximumf %5, %6 : vector<8x256xf32>
    %c0_6 = arith.constant 0 : index
    %c0_7 = arith.constant 0 : index
    %8 = vector.load %arg2[%c0_6, %c0_7] : memref<256x1xf32, #tpu.memory_space<vmem>>, vector<256x1xf32>
    %cst_8 = arith.constant dense<0.000000e+00> : vector<8x1xf32>
    %9 = tpu.matmul %7, %8, %cst_8 {dimension_numbers = #tpu.dot_dimension_numbers<[1], [0], [0], [1], [0, 0, 1, 1], [], []>} : vector<8x256xf32>, vector<256x1xf32>, vector<8x1xf32> -> vector<8x1xf32>
    %c0_9 = arith.constant 0 : index
    %c0_10 = arith.constant 0 : index
    %10 = vector.load %arg5[%c0_9, %c0_10] : memref<2x8xf32, #tpu.memory_space<vmem>>, vector<2x8xf32>
    %cst_11 = arith.constant dense<0.000000e+00> : vector<2x1xf32>
    %11 = tpu.matmul %10, %9, %cst_11 {dimension_numbers = #tpu.dot_dimension_numbers<[1], [0], [0], [1], [0, 0, 1, 1], [], []>} : vector<2x8xf32>, vector<8x1xf32>, vector<2x1xf32> -> vector<2x1xf32>
    %c0_12 = arith.constant 0 : index
    %c0_13 = arith.constant 0 : index
    %12 = vector.load %arg6[%c0_12, %c0_13] : memref<2x1xf32, #tpu.memory_space<vmem>>, vector<2x1xf32>
    %13 = arith.addf %11, %12 : vector<2x1xf32>
    %14 = vector.shape_cast %13 : vector<2x1xf32> to vector<1x2x1xf32>
    %c0_14 = arith.constant 0 : index
    %c0_15 = arith.constant 0 : index
    %c0_16 = arith.constant 0 : index
    %15 = vector.load %arg7[%c0_14, %c0_15, %c0_16] : memref<1x2x1xf32, #tpu.memory_space<vmem>>, vector<1x2x1xf32>
    tpu.vector_store %arg7[%c0_14, %c0_15, %c0_16], %14 {strides = array<i32>} : memref<1x2x1xf32, #tpu.memory_space<vmem>>, vector<1x2x1xf32>,
    return
  }
  func.func @transform_0(%arg0: i32) -> (i32, i32) {
    %c0_i32 = arith.constant 0 : i32
    %c0_i32_0 = arith.constant 0 : i32
    return %c0_i32, %arg0 : i32, i32
  }
  func.func @transform_1(%arg0: i32) -> (i32, i32) {
    %c0_i32 = arith.constant 0 : i32
    %c0_i32_0 = arith.constant 0 : i32
    %c0_i32_1 = arith.constant 0 : i32
    return %c0_i32, %c0_i32_0 : i32, i32
  }
  func.func @transform_2(%arg0: i32) -> (i32, i32) {
    %c0_i32 = arith.constant 0 : i32
    %c0_i32_0 = arith.constant 0 : i32
    %c0_i32_1 = arith.constant 0 : i32
    return %c0_i32, %c0_i32_0 : i32, i32
  }
  func.func @transform_3(%arg0: i32) -> (i32, i32) {
    %c0_i32 = arith.constant 0 : i32
    %c0_i32_0 = arith.constant 0 : i32
    %c0_i32_1 = arith.constant 0 : i32
    return %c0_i32, %c0_i32_0 : i32, i32
  }
  func.func @transform_4(%arg0: i32) -> (i32, i32) {
    %c0_i32 = arith.constant 0 : i32
    %c0_i32_0 = arith.constant 0 : i32
    %c0_i32_1 = arith.constant 0 : i32
    return %c0_i32, %c0_i32_0 : i32, i32
  }
  func.func @transform_5(%arg0: i32) -> (i32, i32) {
    %c0_i32 = arith.constant 0 : i32
    %c0_i32_0 = arith.constant 0 : i32
    %c0_i32_1 = arith.constant 0 : i32
    return %c0_i32, %c0_i32_0 : i32, i32
  }
  func.func @transform_6(%arg0: i32) -> (i32, i32, i32) {
    %c0_i32 = arith.constant 0 : i32
    %c0_i32_0 = arith.constant 0 : i32
    %c0_i32_1 = arith.constant 0 : i32
    return %arg0, %c0_i32, %c0_i32_0 : i32, i32, i32
  }
}

</mosaic_0001>

<bundles_post_ra>
// kernel: tpu_custom_call.1
= control target key start
LH: loop header
LB: loop body
LE: loop exit
PB: predicated region body
PF: predicated region fallthrough
CT: control target
= control target key end

     0   :  { %s818_s21 = smov 0   ;;  %s820_s22 = smov 0   ;;  %s997_s0 = inlined_call_operand.vmem [shape: f32[36,512], index: 0, kind: input, shape index: {}]   ;;  %s998_s1 = inlined_call_operand.vmem [shape: f32[256,1], index: 1, kind: input, shape index: {}]   ;;  %s999_s2 = inlined_call_operand.vmem [shape: f32[8,36], index: 2, kind: input, shape index: {}]   ;;  %s1000_s3 = inlined_call_operand.vmem [shape: f32[8,1], index: 3, kind: input, shape index: {}]   ;;  %s1001_s4 = inlined_call_operand.vmem [shape: f32[2,8], index: 4, kind: input, shape index: {}]   ;;  %s1002_s5 = inlined_call_operand.vmem [shape: f32[2,1], index: 5, kind: input, shape index: {}]   ;;  %s1003_s6 = inlined_call_operand.vmem [shape: f32[2,2,1], index: 6, kind: output, shape index: {}]  }
   0x1   :  { %s822_s23 = smov 0  }
   0x2 LB: > { %s629_s24 = sadd.s32 4294967295, %s778_s23   ;;  %s835_s25 = sadd.s32 1, %s778_s23   ;;  %s778_s23 = sphi %s822_s23, %s1006_s23   ;;  %s774_s22 = sphi %s820_s22, %s1005_s22   ;;  %s770_s21 = sphi %s818_s21, %s1004_s21  }
   0x3   : > { %s20_s26 = ssub.s32 %s778_s23, %s835_s25  ;;  %s23_s27 = sadd.s32 1, %s774_s22 }
   0x4   : > { %p21_p0 = scmp.eq.s32.totalorder %s20_s26, 0  ;;  %p30_p1 = scmp.ne.s32.totalorder %s774_s22, %s770_s21 }
   0x5   : > { %p31_p2 = scmp.eq.s32.totalorder %s778_s23, 0  ;;  %p632_p4 = scmp.ge.s32.totalorder %s778_s23, 2 }
   0x6   : > { %s844_s28 = scalar_select %p21_p0, %s774_s22, %s23_s27  }
   0x7   : > { %p32_p3 = por %p31_p2, %p30_p1  ;;  %202 = sbr.rel (%p632_p4) target bundleno = 23 (0x17), region = 36 }
   0xe   : > { %205 = sbr.rel (!%p32_p3) target bundleno = 23 (0x17), region = 40  ;;  %s207_s29 = sand.u32 (%p32_p3), 1, %s774_s22  }
   0xf   : > { %s643_s30 = sshll.u32 (%p32_p3), %s778_s23, 4  ;;  %s726_s7 = smul.u32 (%p32_p3), 80, %s207_s29 }
  0x10   : > { %s212_s10 = scalar_lea.vmem (%p32_p3), %s997_s0, %s643_s30 }
  0x11   : > { %v225_v0 = vld [vmem:[%s212_s10] sm:$0xff] (%p32_p3)  ;;  %v227_v1 = vld [vmem:[%s212_s10 + $0x8] sm:$0xff] (%p32_p3)  ;;  %s209_s11 = scalar_lea.vmem (%p32_p3), [#allocation2], %s726_s7 }
  0x12   : > { %v229_v2 = vld [vmem:[%s212_s10 + $0x20] sm:$0xff] (%p32_p3)  ;;  %v231_v3 = vld [vmem:[%s212_s10 + $0x28] sm:$0xff] (%p32_p3)  ;;  %226 = vst [vmem:[%s209_s11] sm:$0xff] (%p32_p3), %v225_v0  ;;  %228 = vst [vmem:[%s209_s11 + $0x8] sm:$0xff] (%p32_p3), %v227_v1 }
  0x13   : > { %v233_v4 = vld [vmem:[%s212_s10 + $0x40] sm:$0xff] (%p32_p3)  ;;  %v235_v5 = vld [vmem:[%s212_s10 + $0x48] sm:$0xff] (%p32_p3)  ;;  %230 = vst [vmem:[%s209_s11 + $0x10] sm:$0xff] (%p32_p3), %v229_v2  ;;  %232 = vst [vmem:[%s209_s11 + $0x18] sm:$0xff] (%p32_p3), %v231_v3 }
  0x14   : > { %234 = vst [vmem:[%s209_s11 + $0x20] sm:$0xff] (%p32_p3), %v233_v4  ;;  %236 = vst [vmem:[%s209_s11 + $0x28] sm:$0xff] (%p32_p3), %v235_v5  ;;  %v237_v6 = vld [vmem:[%s212_s10 + $0x60] sm:$0xff] (%p32_p3)  ;;  %v239_v7 = vld [vmem:[%s212_s10 + $0x68] sm:$0xff] (%p32_p3) }
  0x15   : > { %v241_v8 = vld [vmem:[%s212_s10 + $0x80] sm:$0xff]  ;;  %238 = vst [vmem:[%s209_s11 + $0x30] sm:$0xff] %v237_v6  ;;  %240 = vst [vmem:[%s209_s11 + $0x38] sm:$0xff] %v239_v7  ;;  %v243_v9 = vld [vmem:[%s212_s10 + $0x88] sm:$0xff] }
  0x16   : > { %242 = vst [vmem:[%s209_s11 + $0x40] sm:$0xff] %v241_v8  ;;  %244 = vst [vmem:[%s209_s11 + $0x48] sm:$0xff] %v243_v9 }
  0x17 PF: > { %p635_p5 = scmp.ge.s32.totalorder %s778_s23, 1  ;;  %p249_p6 = scmp.lt.s32.totalorder %s778_s23, 3 }
  0x19   : > { %p250_p7 = pnand %p635_p5, %p249_p6 }
  0x1a   : > { %s256_s12 = sand.u32 (!%p250_p7), 1, %s770_s21   ;;  %v780_v10 = vmov (!%p250_p7), 0.0   ;;  %v781_v11 = vmov (!%p250_p7), 0   ;;  %v300_v12 = vld [vmem:[%s1000_s3] sm:$0xff] (!%p250_p7)  ;;  %v407_v14 = vld [vmem:[%s998_s1 + $0x88] sm:$0xff] (!%p250_p7)  ;;  %v408_v18 = vld [vmem:[%s998_s1 + $0x90] sm:$0xff] (!%p250_p7) }
  0x1b   : > { %253 = sbr.rel (%p250_p7) target bundleno = 693 (0x2b5), region = 63  ;;  %381 = vmatprep.mubr.f32.mxu0 (!%p250_p7), %v780_v10  ;;  %755 = vset.pattern.permute.xlu0 (!%p250_p7), %v781_v11  ;;  %v406_v13 = vld [vmem:[%s998_s1 + $0x80] sm:$0xff] (!%p250_p7)  ;;  %v391_v17 = vld [vmem:[%s998_s1 + $0x8] sm:$0xff] (!%p250_p7)  ;;  %v409_v20 = vld [vmem:[%s998_s1 + $0x98] sm:$0xff] (!%p250_p7)  ;;  %vm310_vm0 = vcmask (!%p250_p7), 1043456   ;;  %vm306_vm1 = vcmask (!%p250_p7), 293888  }
  0x1c   : > { %s727_s13 = smul.u32 (!%p250_p7), 80, %s256_s12  ;;  %303 = vperm.xlu0 (!%p250_p7), %755, %v300_v12   ;;  %v694_v15 = vpack.c.bf16 (!%p250_p7), %v407_v14, %v406_v13  ;;  %v390_v16 = vld [vmem:[%s998_s1] sm:$0xff] (!%p250_p7)  ;;  %v392_v21 = vld [vmem:[%s998_s1 + $0x10] sm:$0xff] (!%p250_p7)  ;;  %v393_v22 = vld [vmem:[%s998_s1 + $0x18] sm:$0xff] (!%p250_p7)  ;;  %v698_v26 = vpack.c.bf16 (!%p250_p7), %v409_v20, %v408_v18  ;;  %vm782_vm2 = vmmov (!%p250_p7), 0   ;;  %vm494_vm3 = vcmask (!%p250_p7), 64512  }
  0x1d   : > { %v696_v19 = vpack.c.bf16 (!%p250_p7), %v391_v17, %v390_v16  ;;  %v700_v31 = vpack.c.bf16 (!%p250_p7), %v393_v22, %v392_v21  ;;  %v410_v36 = vld [vmem:[%s998_s1 + $0xa0] sm:$0xff] (!%p250_p7)  ;;  %v411_v37 = vld [vmem:[%s998_s1 + $0xa8] sm:$0xff] (!%p250_p7)  ;;  %v412_v42 = vld [vmem:[%s998_s1 + $0xb0] sm:$0xff] (!%p250_p7)  ;;  %p285_p8 = scmp.lt.s32.totalorder (!%p250_p7), %s629_s24, 1  ;;  %vm568_vm4 = vcmask (!%p250_p7), 1024  }
  0x1e   : > { %s883_s14 = scalar_lea.vmem (!%p250_p7), [#allocation2], %s727_s13  ;;  %695 = vmatprep.subr.bf16.mxu1 (!%p250_p7), %v694_v15  ;;  %v702_v39 = vpack.c.bf16 (!%p250_p7), %v411_v37, %v410_v36  ;;  %v394_v40 = vld [vmem:[%s998_s1 + $0x20] sm:$0xff] (!%p250_p7)  ;;  %v395_v41 = vld [vmem:[%s998_s1 + $0x28] sm:$0xff] (!%p250_p7)  ;;  %v413_v44 = vld [vmem:[%s998_s1 + $0xb8] sm:$0xff] (!%p250_p7) }
  0x1f   : > { %v291_v23 = vld [vmem:[%s883_s14 + $0x8] sm:$0xff] (!%p250_p7)  ;;  %v293_v24 = vld [vmem:[%s883_s14 + $0x18] sm:$0xff] (!%p250_p7)  ;;  %v290_v25 = vld [vmem:[%s883_s14] sm:$0xff] (!%p250_p7)  ;;  %697 = vmatpush3.bf16.msra.mxu1 (!%p250_p7), %v696_v19  ;;  %v704_v43 = vpack.c.bf16 (!%p250_p7), %v395_v41, %v394_v40  ;;  %v706_v46 = vpack.c.bf16 (!%p250_p7), %v413_v44, %v412_v42 }
  0x20   : > { %v686_v27 = vpack.c.bf16 (!%p250_p7), %v293_v24, %v291_v23  ;;  %v292_v28 = vld [vmem:[%s883_s14 + $0x10] sm:$0xff] (!%p250_p7)  ;;  %v295_v29 = vld [vmem:[%s883_s14 + $0x28] sm:$0xff] (!%p250_p7)  ;;  %v297_v30 = vld [vmem:[%s883_s14 + $0x38] sm:$0xff] (!%p250_p7)  ;;  %699 = vmatprep.subr.bf16.mxu1 (!%p250_p7), %v698_v26 }
  0x21   : > { %v688_v32 = vpack.c.bf16 (!%p250_p7), %v292_v28, %v290_v25  ;;  %v690_v33 = vpack.c.bf16 (!%p250_p7), %v297_v30, %v295_v29  ;;  %v294_v34 = vld [vmem:[%s883_s14 + $0x20] sm:$0xff] (!%p250_p7)  ;;  %v296_v35 = vld [vmem:[%s883_s14 + $0x30] sm:$0xff] (!%p250_p7)  ;;  %v299_v45 = vld [vmem:[%s883_s14 + $0x48] sm:$0xf] (!%p250_p7) }
  0x22   : > { %687 = vmatprep.subr.bf16.mxu0 %v686_v27  ;;  %v692_v38 = vpack.c.bf16 %v296_v35, %v294_v34  ;;  %v396_v47 = vld [vmem:[%s998_s1 + $0x30] sm:$0xff]  ;;  %v397_v48 = vld [vmem:[%s998_s1 + $0x38] sm:$0xff]  ;;  %v414_v49 = vld [vmem:[%s998_s1 + $0xc0] sm:$0xff]  ;;  %s1008_s24 = smov (!%p285_p8, %s629_s24), 1 }
  0x23   : > { %689 = vmatpush1.bf16.msra.mxu0 %v688_v32  ;;  %701 = vmatpush3.bf16.msra.mxu1 %v700_v31  ;;  %v415_v50 = vld [vmem:[%s998_s1 + $0xc8] sm:$0xff]  ;;  %v298_v51 = vld [vmem:[%s883_s14 + $0x40] sm:$0xf]  ;;  %v708_v52 = vpack.c.bf16 %v397_v48, %v396_v47  ;;  %v417_v58 = vld [vmem:[%s998_s1 + $0xd8] sm:$0xff]  ;;  %s636_s9 = sshll.u32 %s1008_s24, 1 }
  0x24   : > { %691 = vmatprep.subr.bf16.mxu0 %v690_v33  ;;  %703 = vmatprep.subr.bf16.mxu1 %v702_v39  ;;  %v289_v53 = vld [vmem:[%s999_s2] sm:$0xff]  ;;  %v710_v54 = vpack.c.bf16 %v415_v50, %v414_v49  ;;  %v399_v56 = vld [vmem:[%s998_s1 + $0x48] sm:$0xff]  ;;  %v416_v57 = vld [vmem:[%s998_s1 + $0xd0] sm:$0xff]  ;;  %s288_s15 = scalar_lea.vmem %s1003_s6, %s636_s9 }
  0x25   : > { %v398_v55 = vld [vmem:[%s998_s1 + $0x40] sm:$0xff]  ;;  %v714_v60 = vpack.c.bf16 %v417_v58, %v416_v57  ;;  %v400_v61 = vld [vmem:[%s998_s1 + $0x50] sm:$0xff]  ;;  %v401_v62 = vld [vmem:[%s998_s1 + $0x58] sm:$0xff] }
  0x26   : > { %v712_v59 = vpack.c.bf16 %v399_v56, %v398_v55  ;;  %v418_v63 = vld [vmem:[%s998_s1 + $0xe0] sm:$0xff]  ;;  %v419_v0 = vld [vmem:[%s998_s1 + $0xe8] sm:$0xff]  ;;  %v716_v1 = vpack.c.bf16 %v401_v62, %v400_v61  ;;  %v420_v6 = vld [vmem:[%s998_s1 + $0xf0] sm:$0xff] }
  0x27   : > { %693 = vmatpush1.bf16.msra.mxu0 %v692_v38  ;;  %705 = vmatpush3.bf16.msra.mxu1 %v704_v43  ;;  %v718_v2 = vpack.c.bf16 %v419_v0, %v418_v63  ;;  %v402_v3 = vld [vmem:[%s998_s1 + $0x60] sm:$0xff]  ;;  %v403_v4 = vld [vmem:[%s998_s1 + $0x68] sm:$0xff]  ;;  %v421_v7 = vld [vmem:[%s998_s1 + $0xf8] sm:$0xff] }
  0x28   : > { %637 = vmatprep.subr.msk.mxu0 %vm310_vm0, %v299_v45  ;;  %707 = vmatprep.subr.bf16.mxu1 %v706_v46  ;;  %v720_v5 = vpack.c.bf16 %v403_v4, %v402_v3  ;;  %v722_v8 = vpack.c.bf16 %v421_v7, %v420_v6  ;;  %v404_v9 = vld [vmem:[%s998_s1 + $0x70] sm:$0xff]  ;;  %v405_v11 = vld [vmem:[%s998_s1 + $0x78] sm:$0xff]  ;;  %v492_v23 = vld [vmem:[%s1001_s4] sm:$0x3] }
  0x29   : > { %v724_v12 = vpack.c.bf16 %v405_v11, %v404_v9  ;;  %v493_v24 = vld [vmem:[%s1002_s5] sm:$0x3] }
  0x2b   : > { %638 = vmatpush1.msk.msra.mxu0 %vm310_vm0, %v298_v51  ;;  %709 = vmatpush3.bf16.msra.mxu1 %v708_v52 }
  0x2c   : > { %639 = vmatmul.mubr.msk.f32.vlgmr.msra.gmra.mrb[0].mxu0 %vm306_vm1, %v289_v53  ;;  %711 = vmatprep.subr.bf16.mxu1 %v710_v54 }
  0x2d   : > { %681 = vmatprep.subr.mxu0 %v780_v10  ;;  %683 = vmatprep.mubr.msk.f32.mxu0 %vm782_vm2, %v780_v10 }
  0x2f   : > { %713 = vmatpush3.bf16.msra.mxu1 %v712_v59 }
  0x30   : > { %715 = vmatprep.subr.bf16.mxu1 %v714_v60 }
  0x33   : > { %717 = vmatpush3.bf16.msra.mxu1 %v716_v1 }
  0x34   : > { %719 = vmatprep.subr.bf16.mxu1 %v718_v2 }
  0x37   : > { %721 = vmatpush3.bf16.msra.mxu1 %v720_v5 }
  0x38   : > { %723 = vmatprep.subr.bf16.mxu1 %v722_v8 }
  0x3b   : > { %725 = vmatpush3.bf16.msra.mxu1 %v724_v12 }
  0x9b   : > { %v304_v13 = vpop.permute.xlu0 %303 }
  0xff   : > { %v383_v14 = vpop.f32.mrb[0].mxu0 }
 0x100   : > { %v384_v15 = vadd.f32 %v383_v14, %v304_v13  ;;  %v385_v16 = vpop.f32.mrb[1].mxu0 }
 0x101   : > { %v386_v17 = vadd.f32 %v385_v16, %v304_v13 }
 0x102   : > { %v388_v19 = vmax.f32 %v384_v15, 0.0 }
 0x103   : > { %v389_v18 = vmax.f32 %v386_v17, 0.0 }
 0x105   : > { %486 = vmatprep.mubr.f32.mxu1 %v389_v18 }
 0x106   : > { %487 = vmatmul.mubr.f32.vlgmr.msra.gmra.mrb[0].mxu1 %v388_v19 }
 0x1d9   : > { %v676_v20 = vpop.f32.mrb[0].mxu1 }
 0x1da   : > { %v677_v21 = vpop.f32.mrb[1].mxu1 }
 0x1db   : > { %v678_v22 = vadd.f32 %v677_v21, %v676_v20 }
 0x1dd   : > { %682 = vmatpush3.msra.mxu0 %v678_v22 }
 0x1de   : > { %684 = vmatmul.mubr.msk.f32.vlgmr.msra.gmra.mrb[2].mxu0 %vm494_vm3, %v492_v23 }
 0x2b1   : > { %v564_v10 = vpop.f32.mrb[2].mxu0 }
 0x2b2   : > { %v565_v25 = vadd.f32 %v564_v10, %v493_v24  ;;  %v685_v26 = vpop.f32.mrb[3].mxu0 }
 0x2b4   : > { %569 = vst.msk [vmem:[%s288_s15] sm:$0x3] %vm568_vm4, %v565_v25 }
 0x2b5 PF: > { %p13_p9 = scmp.ge.s32.totalorder %s835_s25, 4   ;;  %s1004_s21 = smov %s774_s22 }
 0x2b6   : > { %s1005_s22 = smov %s844_s28  ;;  %s1006_s23 = smov %s835_s25 }
 0x2b7   :  { %15 = sbr.rel (!%p13_p9) target bundleno = 2 (0x2), region = 102 }

</bundles_post_ra>
